<compile_context>
chip_gen: v5e
topology: v5e:2x2
jax: 0.10.0
libtpu: 0.0.40
codegen_flags: <defaults>
</compile_context>

<pallas_src>
import jax
import jax.numpy as jnp
from jax.experimental import pallas as pl
from jax.experimental.pallas import tpu as pltpu


def _round_up(x: int, m: int) -> int:
    return ((x + m - 1) // m) * m


def _vmem_ceiling_bytes() -> int:
    """Usable per-kernel VMEM budget: ~85% of the chip's physical capacity."""
    cap = 64 << 20  # conservative fallback (v7x per-TC VMEM)
    try:
        info = pltpu.get_tpu_info()
        cap = int(getattr(info, "vmem_capacity_bytes", cap)) or cap
    except Exception:
        pass
    return max(32 << 20, int(cap * 0.85))


def _make_mlp_kernel(tile: int, chunk: int, compute_dtype):
    """3-layer MLP over one (tile, nb_inputs) batch tile, in sub-chunks."""
    offsets = tuple(range(0, tile, chunk))

    def kernel(x_ref, w1_ref, b1_ref, w2_ref, b2_ref, w3_ref, b3_ref, o_ref):
        # Weights/biases are pinned in VMEM; load once per grid step.
        w1 = w1_ref[...]
        b1 = b1_ref[...]
        w2 = w2_ref[...]
        b2 = b2_ref[...]
        w3 = w3_ref[...]
        b3 = b3_ref[...]
        for off in offsets:                       # static unrolled sub-chunks
            rows = min(chunk, tile - off)
            r = pl.ds(off, rows)
            # In-kernel cast of the x sub-chunk to the MXU feed dtype.
            xc = x_ref[r, :].astype(compute_dtype)
            # fc1: Linear + ReLU (f32 accumulate; bias/ReLU in f32)
            h1 = jnp.dot(xc, w1, preferred_element_type=jnp.float32)
            h1 = jnp.maximum(h1 + b1, 0.0)
            # fc2: Linear + ReLU
            h2 = jnp.dot(h1.astype(compute_dtype), w2,
                         preferred_element_type=jnp.float32)
            h2 = jnp.maximum(h2 + b2, 0.0)
            # fc3: Linear (no activation)
            out = jnp.dot(h2.astype(compute_dtype), w3,
                          preferred_element_type=jnp.float32) + b3
            o_ref[r, :] = out.astype(o_ref.dtype)

    return kernel


def reward_network_forward(x, w1, b1, w2, b2, w3, b3, *, tile_b=1024,
                           compute_dtype=None, sub_chunk=256):
    """Pallas forward pass of RewardNetwork.

    x: (B, nb_inputs); w_i: (in, out); b_i: (out,).
    tile_b: batch rows per grid step (default 1024; sweep up to 4096 for
      very large B).
    compute_dtype: dtype fed to the MXU. bf16 is recommended on ALL
      generations (v5e/v6e/v7x MXUs are bf16-native); accumulation and the
      bias/ReLU path stay f32. Defaults to x.dtype (exact f32 path).
    """
    B, nb_inputs = x.shape
    nb_hidden = w1.shape[1]
    nb_outputs = w3.shape[1]
    out_dtype = x.dtype
    if compute_dtype is None:
        compute_dtype = x.dtype
    compute_dtype = jnp.dtype(compute_dtype)

    # --- Pad hidden dim to a 128-lane multiple (bit-exact: ReLU(0)=0). -----
    h_pad = _round_up(max(nb_hidden, 1), 128)
    if h_pad != nb_hidden:
        w1 = jnp.zeros((nb_inputs, h_pad), w1.dtype).at[:, :nb_hidden].set(w1)
        b1 = jnp.zeros((h_pad,), b1.dtype).at[:nb_hidden].set(b1)
        w2 = jnp.zeros((h_pad, h_pad), w2.dtype).at[:nb_hidden, :nb_hidden].set(w2)
        b2 = jnp.zeros((h_pad,), b2.dtype).at[:nb_hidden].set(b2)
        w3 = jnp.zeros((h_pad, nb_outputs), w3.dtype).at[:nb_hidden, :].set(w3)

    # --- Batch tiling -------------------------------------------------------
    c_item = compute_dtype.itemsize
    x_item = jnp.dtype(x.dtype).itemsize
    o_item = jnp.dtype(out_dtype).itemsize
    sub = max(8, 32 // c_item)            # sublane packing: 8 f32 / 16 bf16 / 32 fp8
    tile = min(int(tile_b), _round_up(B, sub))
    tile = max(sub, _round_up(tile, sub))
    if B > sub:                           # keep >=2 grid steps (v7x megacore)
        tile = min(tile, max(sub, _round_up(pl.cdiv(B, 2), sub)))
    b_pad = _round_up(B, tile)
    if b_pad != B:
        x = jnp.pad(x, ((0, b_pad - B), (0, 0)))
    grid = (b_pad // tile,)
    chunk = max(sub, min(tile, int(sub_chunk)))   # multiple of sub by construction

    # x stays in its native dtype (cast happens in-kernel); weights are tiny,
    # so casting them in the wrapper is a one-off negligible cost.
    w1c = w1.astype(compute_dtype)
    w2c = w2.astype(compute_dtype)
    w3c = w3.astype(compute_dtype)
    b1_2d = b1.reshape(1, h_pad).astype(jnp.float32)
    b2_2d = b2.reshape(1, h_pad).astype(jnp.float32)
    b3_2d = b3.reshape(1, nb_outputs).astype(jnp.float32)

    weight_bytes = ((w1c.size + w2c.size + w3c.size) * c_item
                    + (b1_2d.size + b2_2d.size + b3_2d.size) * 4)

    vmem_ceiling = _vmem_ceiling_bytes()
    # Single-buffer the pinned (constant-index) weights when double-buffering
    # them would eat more than a quarter of the VMEM budget (v7x protection).
    pin_single = (2 * weight_bytes) > (vmem_ceiling // 4)
    wbuf = 1 if pin_single else 2

    vmem_bytes = (2 * tile * nb_inputs * x_item     # double-buffered x tiles
                  + 2 * tile * nb_outputs * o_item  # double-buffered out tiles
                  + wbuf * weight_bytes             # pinned weights/biases
                  + 4 * chunk * h_pad * 4           # f32 h1/h2 intermediates
                  + (4 << 20))                      # compiler scratch headroom
    vmem_limit = int(min(max(vmem_bytes, 16 << 20), vmem_ceiling))

    flops = 2 * b_pad * (nb_inputs * h_pad + h_pad * h_pad + h_pad * nb_outputs)
    bytes_accessed = (b_pad * nb_inputs * x_item
                      + b_pad * nb_outputs * o_item
                      + weight_bytes)
    cost = pl.CostEstimate(flops=int(flops), transcendentals=0,
                           bytes_accessed=int(bytes_accessed))

    def pinned(a):  # weights/biases: resident in VMEM across all grid steps
        if pin_single:
            return pl.BlockSpec(a.shape, lambda i: (0, 0),
                                pipeline_mode=pl.Buffered(1))
        return pl.BlockSpec(a.shape, lambda i: (0, 0))

    kernel = _make_mlp_kernel(tile, chunk, compute_dtype)

    out = pl.pallas_call(
        kernel,
        out_shape=jax.ShapeDtypeStruct((b_pad, nb_outputs), out_dtype),
        grid_spec=pltpu.PrefetchScalarGridSpec(
            num_scalar_prefetch=0,
            grid=grid,
            in_specs=[
                pl.BlockSpec((tile, nb_inputs), lambda i: (i, 0)),  # x tile
                pinned(w1c), pinned(b1_2d),
                pinned(w2c), pinned(b2_2d),
                pinned(w3c), pinned(b3_2d),
            ],
            out_specs=pl.BlockSpec((tile, nb_outputs), lambda i: (i, 0)),
        ),
        compiler_params=pltpu.CompilerParams(
            dimension_semantics=("parallel",),   # megacore sharding on v7x
            vmem_limit_bytes=vmem_limit,
        ),
        cost_estimate=cost,
    )(x, w1c, b1_2d, w2c, b2_2d, w3c, b3_2d)

    # Strip batch padding; output columns were never padded.
    return out[:B]


def init_params(key, nb_inputs, nb_hidden, nb_outputs, dtype=jnp.float32):
    """PyTorch nn.Linear default init: U[-1/sqrt(fan_in), 1/sqrt(fan_in)]."""
    ks = jax.random.split(key, 6)

    def lin(kw, kb, fan_in, fan_out):
        bound = 1.0 / jnp.sqrt(jnp.array(fan_in, dtype=jnp.float32))
        w = jax.random.uniform(kw, (fan_in, fan_out), dtype, -bound, bound)
        b = jax.random.uniform(kb, (fan_out,), dtype, -bound, bound)
        return w, b

    w1, b1 = lin(ks[0], ks[1], nb_inputs, nb_hidden)
    w2, b2 = lin(ks[2], ks[3], nb_hidden, nb_hidden)
    w3, b3 = lin(ks[4], ks[5], nb_hidden, nb_outputs)
    return w1, b1, w2, b2, w3, b3


def reference_forward(x, w1, b1, w2, b2, w3, b3):
    h1 = jnp.maximum(x @ w1 + b1, 0.0)
    h2 = jnp.maximum(h1 @ w2 + b2, 0.0)
    return h2 @ w3 + b3


if __name__ == "__main__":
    key = jax.random.PRNGKey(0)
    k_x, k_p = jax.random.split(key)

    # Small shapes consistent with the module: a (batch, features) MLP.
    # batch=20 is deliberately not a tile multiple so the padding path and a
    # multi-step batch grid are exercised even at this tiny size.
    batch, nb_inputs, nb_hidden, nb_outputs = 20, 32, 64, 16

    x = jax.random.normal(k_x, (batch, nb_inputs), dtype=jnp.float32)
    params = init_params(k_p, nb_inputs, nb_hidden, nb_outputs)
    ref = reference_forward(x, *params)

    # Exact f32 path with an explicit tiny tile (multi-step grid + padding).
    out_small = reward_network_forward(x, *params, tile_b=8)
    out_small = jax.block_until_ready(out_small)
    assert out_small.shape == (batch, nb_outputs)
    assert jnp.allclose(out_small, ref, atol=1e-5, rtol=1e-5), \
        "Pallas output mismatch vs reference (f32, tile_b=8)"

    # Exact f32 path with default tiling (exercises the >=2-grid-step cap).
    out_def = reward_network_forward(x, *params)
    out_def = jax.block_until_ready(out_def)
    assert jnp.allclose(out_def, ref, atol=1e-5, rtol=1e-5), \
        "Pallas output mismatch vs reference (f32, default tile)"

    # bf16 MXU feed (recommended on all generations); f32 accumulate/bias/ReLU.
    out_bf16 = reward_network_forward(x, *params, compute_dtype=jnp.bfloat16)
    out_bf16 = jax.block_until_ready(out_bf16)
    assert jnp.allclose(out_bf16, ref, atol=2e-1, rtol=2e-1), \
        "Pallas bf16 output diverges too far from f32 reference"

    print("KERNEL_OK")
</pallas_src>

<mosaic_0001>
module attributes {stable_mosaic.version = 11 : i64} {
  func.func @kernel(%arg0: i32, %arg1: memref<8x32xf32, #tpu.memory_space<vmem>>, %arg2: memref<32x128xf32, #tpu.memory_space<vmem>>, %arg3: memref<1x128xf32, #tpu.memory_space<vmem>>, %arg4: memref<128x128xf32, #tpu.memory_space<vmem>>, %arg5: memref<1x128xf32, #tpu.memory_space<vmem>>, %arg6: memref<128x16xf32, #tpu.memory_space<vmem>>, %arg7: memref<1x16xf32, #tpu.memory_space<vmem>>, %arg8: memref<8x16xf32, #tpu.memory_space<vmem>>) attributes {dimension_semantics = [#tpu.dimension_semantics<parallel>], iteration_bounds = array<i64: 3>, scalar_prefetch = 0 : i64, scratch_operands = 0 : i64, tpu.core_type = #tpu.core_type<tc>, window_params = [{transform_indices = @transform_0, window_bounds = array<i64: 8, 32>}, {pipeline_mode = #tpu.pipeline_mode<synchronous>, transform_indices = @transform_1, window_bounds = array<i64: 32, 128>}, {pipeline_mode = #tpu.pipeline_mode<synchronous>, transform_indices = @transform_2, window_bounds = array<i64: 1, 128>}, {pipeline_mode = #tpu.pipeline_mode<synchronous>, transform_indices = @transform_3, window_bounds = array<i64: 128, 128>}, {pipeline_mode = #tpu.pipeline_mode<synchronous>, transform_indices = @transform_4, window_bounds = array<i64: 1, 128>}, {pipeline_mode = #tpu.pipeline_mode<synchronous>, transform_indices = @transform_5, window_bounds = array<i64: 128, 16>}, {pipeline_mode = #tpu.pipeline_mode<synchronous>, transform_indices = @transform_6, window_bounds = array<i64: 1, 16>}, {transform_indices = @transform_7, window_bounds = array<i64: 8, 16>}]} {
    %c0 = arith.constant 0 : index
    %c0_0 = arith.constant 0 : index
    %0 = vector.load %arg2[%c0, %c0_0] : memref<32x128xf32, #tpu.memory_space<vmem>>, vector<32x128xf32>
    %c0_1 = arith.constant 0 : index
    %c0_2 = arith.constant 0 : index
    %1 = vector.load %arg3[%c0_1, %c0_2] : memref<1x128xf32, #tpu.memory_space<vmem>>, vector<1x128xf32>
    %c0_3 = arith.constant 0 : index
    %c0_4 = arith.constant 0 : index
    %2 = vector.load %arg4[%c0_3, %c0_4] : memref<128x128xf32, #tpu.memory_space<vmem>>, vector<128x128xf32>
    %c0_5 = arith.constant 0 : index
    %c0_6 = arith.constant 0 : index
    %3 = vector.load %arg5[%c0_5, %c0_6] : memref<1x128xf32, #tpu.memory_space<vmem>>, vector<1x128xf32>
    %c0_7 = arith.constant 0 : index
    %c0_8 = arith.constant 0 : index
    %4 = vector.load %arg6[%c0_7, %c0_8] : memref<128x16xf32, #tpu.memory_space<vmem>>, vector<128x16xf32>
    %c0_9 = arith.constant 0 : index
    %c0_10 = arith.constant 0 : index
    %5 = vector.load %arg7[%c0_9, %c0_10] : memref<1x16xf32, #tpu.memory_space<vmem>>, vector<1x16xf32>
    %c0_11 = arith.constant 0 : index
    %c0_12 = arith.constant 0 : index
    %6 = vector.load %arg1[%c0_11, %c0_12] : memref<8x32xf32, #tpu.memory_space<vmem>>, vector<8x32xf32>
    %cst = arith.constant dense<0.000000e+00> : vector<8x128xf32>
    %7 = tpu.matmul %6, %0, %cst {dimension_numbers = #tpu.dot_dimension_numbers<[1], [0], [0], [1], [0, 0, 1, 1], [], []>} : vector<8x32xf32>, vector<32x128xf32>, vector<8x128xf32> -> vector<8x128xf32>
    %8 = vector.broadcast %1 : vector<1x128xf32> to vector<8x128xf32>
    %9 = arith.addf %7, %8 : vector<8x128xf32>
    %cst_13 = arith.constant 0.000000e+00 : f32
    %10 = vector.broadcast %cst_13 : f32 to vector<8x128xf32>
    %11 = arith.maximumf %9, %10 : vector<8x128xf32>
    %cst_14 = arith.constant dense<0.000000e+00> : vector<8x128xf32>
    %12 = tpu.matmul %11, %2, %cst_14 {dimension_numbers = #tpu.dot_dimension_numbers<[1], [0], [0], [1], [0, 0, 1, 1], [], []>} : vector<8x128xf32>, vector<128x128xf32>, vector<8x128xf32> -> vector<8x128xf32>
    %13 = vector.broadcast %3 : vector<1x128xf32> to vector<8x128xf32>
    %14 = arith.addf %12, %13 : vector<8x128xf32>
    %cst_15 = arith.constant 0.000000e+00 : f32
    %15 = vector.broadcast %cst_15 : f32 to vector<8x128xf32>
    %16 = arith.maximumf %14, %15 : vector<8x128xf32>
    %cst_16 = arith.constant dense<0.000000e+00> : vector<8x16xf32>
    %17 = tpu.matmul %16, %4, %cst_16 {dimension_numbers = #tpu.dot_dimension_numbers<[1], [0], [0], [1], [0, 0, 1, 1], [], []>} : vector<8x128xf32>, vector<128x16xf32>, vector<8x16xf32> -> vector<8x16xf32>
    %18 = vector.broadcast %5 : vector<1x16xf32> to vector<8x16xf32>
    %19 = arith.addf %17, %18 : vector<8x16xf32>
    %c0_17 = arith.constant 0 : index
    %c0_18 = arith.constant 0 : index
    %20 = vector.load %arg8[%c0_17, %c0_18] : memref<8x16xf32, #tpu.memory_space<vmem>>, vector<8x16xf32>
    tpu.vector_store %arg8[%c0_17, %c0_18], %19 {strides = array<i32>} : memref<8x16xf32, #tpu.memory_space<vmem>>, vector<8x16xf32>,
    return
  }
  func.func @transform_0(%arg0: i32) -> (i32, i32) {
    %c0_i32 = arith.constant 0 : i32
    %c0_i32_0 = arith.constant 0 : i32
    return %arg0, %c0_i32 : i32, i32
  }
  func.func @transform_1(%arg0: i32) -> (i32, i32) {
    %c0_i32 = arith.constant 0 : i32
    %c0_i32_0 = arith.constant 0 : i32
    %c0_i32_1 = arith.constant 0 : i32
    return %c0_i32, %c0_i32_0 : i32, i32
  }
  func.func @transform_2(%arg0: i32) -> (i32, i32) {
    %c0_i32 = arith.constant 0 : i32
    %c0_i32_0 = arith.constant 0 : i32
    %c0_i32_1 = arith.constant 0 : i32
    return %c0_i32, %c0_i32_0 : i32, i32
  }
  func.func @transform_3(%arg0: i32) -> (i32, i32) {
    %c0_i32 = arith.constant 0 : i32
    %c0_i32_0 = arith.constant 0 : i32
    %c0_i32_1 = arith.constant 0 : i32
    return %c0_i32, %c0_i32_0 : i32, i32
  }
  func.func @transform_4(%arg0: i32) -> (i32, i32) {
    %c0_i32 = arith.constant 0 : i32
    %c0_i32_0 = arith.constant 0 : i32
    %c0_i32_1 = arith.constant 0 : i32
    return %c0_i32, %c0_i32_0 : i32, i32
  }
  func.func @transform_5(%arg0: i32) -> (i32, i32) {
    %c0_i32 = arith.constant 0 : i32
    %c0_i32_0 = arith.constant 0 : i32
    %c0_i32_1 = arith.constant 0 : i32
    return %c0_i32, %c0_i32_0 : i32, i32
  }
  func.func @transform_6(%arg0: i32) -> (i32, i32) {
    %c0_i32 = arith.constant 0 : i32
    %c0_i32_0 = arith.constant 0 : i32
    %c0_i32_1 = arith.constant 0 : i32
    return %c0_i32, %c0_i32_0 : i32, i32
  }
  func.func @transform_7(%arg0: i32) -> (i32, i32) {
    %c0_i32 = arith.constant 0 : i32
    %c0_i32_0 = arith.constant 0 : i32
    return %arg0, %c0_i32 : i32, i32
  }
}

</mosaic_0001>

<bundles_post_ra>
// kernel: tpu_custom_call.1
= control target key start
LH: loop header
LB: loop body
LE: loop exit
PB: predicated region body
PF: predicated region fallthrough
CT: control target
= control target key end

     0   :  { %12 = vsyncpa [#allocation3], 0  ;;  %s924_s0 = inlined_call_operand.hbm [shape: f32[24,32], index: 0, kind: input, shape index: {}]   ;;  %s925_s1 = inlined_call_operand.hbm [shape: f32[32,128], index: 1, kind: input, shape index: {}]   ;;  %s926_s2 = inlined_call_operand.vmem [shape: f32[1,128], index: 2, kind: input, shape index: {}]   ;;  %s927_s3 = inlined_call_operand.vmem [shape: f32[128,128], index: 3, kind: input, shape index: {}]   ;;  %s928_s4 = inlined_call_operand.vmem [shape: f32[1,128], index: 4, kind: input, shape index: {}]   ;;  %s929_s5 = inlined_call_operand.vmem [shape: f32[128,16], index: 5, kind: input, shape index: {}]   ;;  %s930_s6 = inlined_call_operand.vmem [shape: f32[1,16], index: 6, kind: input, shape index: {}]   ;;  %s931_s7 = inlined_call_operand.vmem [shape: f32[24,16], index: 7, kind: output, shape index: {}]  }
   0x1   :  { %14 = vsyncpa [#allocation3 + $0x1], 0 }
   0x2   :  { %15 = vsyncpa [#allocation5], 0  ;;  %s716_s24 = smov 0   ;;  %s718_s25 = smov 0  }
   0x3   :  { %s720_s26 = smov 0   ;;  %s722_s27 = smov 0  }
   0x4 LB: > { %s215_s30 = sshll.u32 %s925_s1, 4  ;;  %s738_s8 = sadd.s32 4294967295, %s671_s27   ;;  %s671_s27 = sphi %s722_s27, %s938_s27   ;;  %s667_s26 = sphi %s720_s26, %s937_s26   ;;  %s663_s25 = sphi %s718_s25, %s936_s25   ;;  %s659_s24 = sphi %s716_s24, %s935_s24   ;;  %s216_s30 = int_to_ptr.hbm [resolvable:$true] %s215_s30 }
   0x5   : > { %p506_p0 = scmp.ge.s32.totalorder %s671_s27, 1  ;;  %p42_p1 = scmp.eq.s32.totalorder %s738_s8, 0 }
   0x6   : > { %p204_p2 = scmp.lt.s32.totalorder %s671_s27, 4  ;;  %s673_s10 = smov [#allocation4]  }
   0x7   : > { %s217_s11 = sshll.u32 %s673_s10, 4  ;;  %s674_s12 = smov 128   ;;  %s218_s11 = int_to_ptr.vmem [resolvable:$true] %s217_s11 }
   0x8   : > { %p743_p3 = pnand %p506_p0, %p204_p2  ;;  %s675_s13 = smov 8  }
   0x9   : > { %s752_s14 = sadd.s32 1, %s671_s27   ;;  %s28_s16 = sadd.s32 1, %s667_s26 }
   0xa   : > { %p524_p4 = pneg %p743_p3  ;;  %s25_s15 = ssub.s32 %s671_s27, %s752_s14 }
   0xb   : > { %p26_p6 = scmp.eq.s32.totalorder %s25_s15, 0  ;;  %p35_p7 = scmp.ne.s32.totalorder %s667_s26, %s663_s25 }
   0xc   : > { %p525_p5 = pnand %p524_p4, %p42_p1  ;;  %p36_p8 = scmp.eq.s32.totalorder %s671_s27, 0 }
   0xd   : > { %p41_p9 = scmp.ne.s32.totalorder %s663_s25, %s659_s24  ;;  %p533_p12 = scmp.lt.s32.totalorder %s671_s27, 3 }
   0xe   : > { %527 = dma.hbm_to_vmem [thread:$0]  (!%p525_p5), %s216_s30, 512, %s218_s11, [#allocation5], %s674_s12, %s674_s12, %s675_s13  }
   0xf   : > { %s762_s17 = scalar_select %p26_p6, %s667_s26, %s28_s16  }
  0x10   : > { %p37_p10 = por %p36_p8, %p35_p7  ;;  %p766_p11 = por %p42_p1, %p41_p9 }
  0x11   : > { %s246_s19 = sand.u32 1, %s667_s26   ;;  %s510_s21 = sshll.u32 %s671_s27, 3 }
  0x12   : > { %s509_s20 = sshll.u32 %s246_s19, 3  ;;  %s254_s28 = scalar_lea.hbm %s924_s0, %s510_s21 }
  0x13   : > { %s250_s29 = scalar_lea.vmem [#allocation2], %s509_s20  ;;  %s256_s10 = sshll.u32 %s254_s28, 4  ;;  %s257_s10 = int_to_ptr.hbm [resolvable:$true] %s256_s10 }
  0x14   : > { %s258_s30 = sshll.u32 %s250_s29, 4  ;;  %p776_p13 = pnand %p533_p12, %p37_p10  ;;  %s259_s30 = int_to_ptr.vmem [resolvable:$true] %s258_s30 }
  0x15   : > { %s247_s11 = scalar_lea.sflag [#allocation3], %s246_s19  ;;  %s603_s12 = sshra.s32 %s257_s10, 4  ;;  %s604_s12 = int_to_ptr.hbm [resolvable:$true] %s603_s12 }
  0x16   : > { %s605_s13 = scalar_lea.hbm %s604_s12, 8  ;;  %p607_p2 = pneg %p776_p13 }
  0x17   : > { %p606_p0 = scmp.ne.s32.totalorder %s604_s12, %s605_s13  ;;  %s610_s16 = scalar_lea.hbm %s924_s0, 24 }
  0x18   : > { %p611_p6 = scmp.lt.s32.totalorder %s604_s12, %s924_s0  ;;  %p612_p7 = scmp.lt.s32.totalorder %s610_s16, %s605_s13 }
  0x19   : > { %p608_p4 = pnand %p607_p2, %p606_p0 }
  0x1a   : > { %p613_p8 = por %p612_p7, %p611_p6 }
  0x1b   : > { %p609_p5 = pneg %p608_p4 }
  0x1d   : > { %p614_p9 = pnand %p613_p8, %p609_p5 }
  0x1f   : > { %617 = shalt.err (!%p614_p9)
}
  0x20   : > { %531 = dma.hbm_to_vmem [thread:$0]  (!%p776_p13), %s257_s10, 128, %s259_s30, %s247_s11  }
  0x21   : > { %267 = sbr.rel (%p743_p3) target bundleno = 444 (0x1bc), region = 48  ;;  %s269_s19 = sand.u32 (!%p743_p3), 1, %s663_s25  }
  0x22   : > { %s512_s22 = sshll.u32 (!%p743_p3), %s269_s19, 3  ;;  %s270_s23 = scalar_lea.sflag (!%p743_p3), [#allocation3], %s269_s19 }
  0x23   : > { %s273_s28 = scalar_lea.vmem (!%p743_p3), [#allocation2], %s512_s22 }
  0x26   : > { %650 = dma.done.wait (%p766_p11), %s270_s23, 128  }
  0x27   : > { %652 = vsyncadd (%p766_p11), %s270_s23, 4294967168 }
  0x28   : > { %654 = dma.done.wait (%p42_p1), [#allocation5], 512  }
  0x29   : > { %656 = vsyncadd (%p42_p1), [#allocation5], 4294966784  ;;  %v316_v0 = vld [vmem:[#allocation4 + $0x18] sm:$0xff]  ;;  %v315_v1 = vld [vmem:[#allocation4 + $0x10] sm:$0xff]  ;;  %vm356_vm0 = vcmask 261120   ;;  %p309_p1 = scmp.lt.s32.totalorder %s738_s8, 2 }
  0x2a   : > { %372 = vmatpush.msra.mxu0 %v316_v0  ;;  %v333_v2 = vld [vmem:[%s927_s3 + $0x78] sm:$0xff]  ;;  %v332_v4 = vld [vmem:[%s927_s3 + $0x70] sm:$0xff]  ;;  %v331_v5 = vld [vmem:[%s927_s3 + $0x68] sm:$0xff]  ;;  %vm428_vm1 = vcmask 130048  }
  0x2b   : > { %v314_v3 = vld [vmem:[#allocation4 + $0x8] sm:$0xff]  ;;  %384 = vmatpush.msra.mxu1 %v333_v2  ;;  %v313_v6 = vld [vmem:[#allocation4] sm:$0xff]  ;;  %v352_v7 = vld [vmem:[%s273_s28] sm:$0xff]  ;;  %s940_s8 = smov (!%p309_p1, %s738_s8), 2 }
  0x2c   : > { %373 = vmatpush.msra.mxu0 %v315_v1  ;;  %v330_v8 = vld [vmem:[%s927_s3 + $0x60] sm:$0xff]  ;;  %v329_v9 = vld [vmem:[%s927_s3 + $0x58] sm:$0xff]  ;;  %v328_v10 = vld [vmem:[%s927_s3 + $0x50] sm:$0xff]  ;;  %s514_s19 = sshll.u32 %s940_s8, 3 }
  0x2d   : > { %385 = vmatpush.msra.mxu1 %v332_v4  ;;  %v327_v11 = vld [vmem:[%s927_s3 + $0x48] sm:$0xff]  ;;  %v326_v12 = vld [vmem:[%s927_s3 + $0x40] sm:$0xff]  ;;  %v325_v13 = vld [vmem:[%s927_s3 + $0x38] sm:$0xff]  ;;  %s312_s29 = scalar_lea.vmem %s931_s7, %s514_s19 }
  0x2e   : > { %374 = vmatpush.msra.mxu0 %v314_v3  ;;  %v324_v14 = vld [vmem:[%s927_s3 + $0x30] sm:$0xff]  ;;  %v323_v15 = vld [vmem:[%s927_s3 + $0x28] sm:$0xff]  ;;  %v322_v16 = vld [vmem:[%s927_s3 + $0x20] sm:$0xff] }
  0x2f   : > { %386 = vmatpush.msra.mxu1 %v331_v5  ;;  %v321_v17 = vld [vmem:[%s927_s3 + $0x18] sm:$0xff]  ;;  %v320_v18 = vld [vmem:[%s927_s3 + $0x10] sm:$0xff]  ;;  %v319_v19 = vld [vmem:[%s927_s3 + $0x8] sm:$0xff] }
  0x30   : > { %375 = vmatpush.msra.mxu0 %v313_v6  ;;  %v318_v20 = vld [vmem:[%s927_s3] sm:$0xff]  ;;  %v350_v21 = vld [vmem:[%s929_s5 + $0x78] sm:$0xff]  ;;  %v349_v22 = vld [vmem:[%s929_s5 + $0x70] sm:$0xff] }
  0x31   : > { %515 = vmatmul.msk.f32.vlgmr.msra.gmra.mxu0 %vm356_vm0, %v352_v7  ;;  %387 = vmatpush.msra.mxu1 %v330_v8  ;;  %v348_v23 = vld [vmem:[%s929_s5 + $0x68] sm:$0xff]  ;;  %v347_v24 = vld [vmem:[%s929_s5 + $0x60] sm:$0xff]  ;;  %v346_v25 = vld [vmem:[%s929_s5 + $0x58] sm:$0xff] }
  0x32   : > { %408 = vmatpush.msra.mxu2 %v350_v21  ;;  %v345_v26 = vld [vmem:[%s929_s5 + $0x50] sm:$0xff]  ;;  %v344_v27 = vld [vmem:[%s929_s5 + $0x48] sm:$0xff]  ;;  %v343_v28 = vld [vmem:[%s929_s5 + $0x40] sm:$0xff] }
  0x33   : > { %388 = vmatpush.msra.mxu1 %v329_v9  ;;  %v342_v29 = vld [vmem:[%s929_s5 + $0x38] sm:$0xff]  ;;  %v341_v30 = vld [vmem:[%s929_s5 + $0x30] sm:$0xff]  ;;  %v340_v31 = vld [vmem:[%s929_s5 + $0x28] sm:$0xff] }
  0x34   : > { %409 = vmatpush.msra.mxu2 %v349_v22  ;;  %v339_v32 = vld [vmem:[%s929_s5 + $0x20] sm:$0xff]  ;;  %v338_v33 = vld [vmem:[%s929_s5 + $0x18] sm:$0xff]  ;;  %v337_v38 = vld [vmem:[%s929_s5 + $0x10] sm:$0xff] }
  0x35   : > { %389 = vmatpush.msra.mxu1 %v328_v10  ;;  %v570_v34 = vld [vmem:[%s926_s2] ss:$0 sm:$0xff]  ;;  %v336_v39 = vld [vmem:[%s929_s5 + $0x8] sm:$0xff] }
  0x36   : > { %410 = vmatpush.msra.mxu2 %v348_v23  ;;  %v335_v40 = vld [vmem:[%s929_s5] sm:$0xff] }
  0x37   : > { %390 = vmatpush.msra.mxu1 %v327_v11  ;;  %v571_v41 = vld [vmem:[%s928_s4] ss:$0 sm:$0xff] }
  0x38   : > { %411 = vmatpush.msra.mxu2 %v347_v24  ;;  %v572_v45 = vld [vmem:[%s930_s6] ss:$0 sm:$0xff] }
  0x39   : > { %391 = vmatpush.msra.mxu1 %v326_v12 }
  0x3a   : > { %412 = vmatpush.msra.mxu2 %v346_v25 }
  0x3b   : > { %392 = vmatpush.msra.mxu1 %v325_v13 }
  0x3c   : > { %413 = vmatpush.msra.mxu2 %v345_v26 }
  0x3d   : > { %393 = vmatpush.msra.mxu1 %v324_v14 }
  0x3e   : > { %414 = vmatpush.msra.mxu2 %v344_v27 }
  0x3f   : > { %394 = vmatpush.msra.mxu1 %v323_v15 }
  0x40   : > { %415 = vmatpush.msra.mxu2 %v343_v28 }
  0x41   : > { %395 = vmatpush.msra.mxu1 %v322_v16 }
  0x42   : > { %416 = vmatpush.msra.mxu2 %v342_v29 }
  0x43   : > { %396 = vmatpush.msra.mxu1 %v321_v17 }
  0x44   : > { %417 = vmatpush.msra.mxu2 %v341_v30 }
  0x45   : > { %397 = vmatpush.msra.mxu1 %v320_v18 }
  0x46   : > { %418 = vmatpush.msra.mxu2 %v340_v31 }
  0x47   : > { %398 = vmatpush.msra.mxu1 %v319_v19 }
  0x48   : > { %419 = vmatpush.msra.mxu2 %v339_v32 }
  0x49   : > { %399 = vmatpush.msra.mxu1 %v318_v20 }
  0x4a   : > { %420 = vmatpush.msra.mxu2 %v338_v33 }
  0x4c   : > { %421 = vmatpush.msra.mxu2 %v337_v38 }
  0x4e   : > { %422 = vmatpush.msra.mxu2 %v336_v39 }
  0x50   : > { %423 = vmatpush.msra.mxu2 %v335_v40 }
  0xae   : > { %v377_v35 = vpop.f32.mrf.mxu0 }
  0xaf   : > { %v378_v36 = vadd.f32 %v570_v34, %v377_v35 }
  0xb1   : > { %v380_v37 = vmax.f32 %v378_v36, 0.0 }
  0xb3   : > { %400 = vmatmul.f32.vlgmr.msra.gmra.mxu1 %v380_v37 }
 0x130   : > { %v401_v42 = vpop.f32.mrf.mxu1 }
 0x131   : > { %v402_v43 = vadd.f32 %v571_v41, %v401_v42 }
 0x133   : > { %v404_v44 = vmax.f32 %v402_v43, 0.0 }
 0x135   : > { %424 = vmatmul.f32.vlgmr.msra.gmra.mxu2 %v404_v44 }
 0x1b8   : > { %v425_v46 = vpop.f32.mrf.mxu2 }
 0x1b9   : > { %v426_v47 = vadd.f32 %v572_v45, %v425_v46 }
 0x1bb   : > { %429 = vst.msk [vmem:[%s312_s29] sm:$0xff] %vm428_vm1, %v426_v47 }
 0x1bc PF: > { %p18_p3 = scmp.ge.s32.totalorder %s752_s14, 5   ;;  %s935_s24 = smov %s663_s25 }
 0x1bd   : > { %s936_s25 = smov %s667_s26  ;;  %s937_s26 = smov %s762_s17 }
 0x1be   : > { %s938_s27 = smov %s752_s14  ;;  %20 = sbr.rel (!%p18_p3) target bundleno = 4 (0x4), region = 92 }
 0x1c3   :  { %449 = vsyncpa [#allocation3], 1 }
 0x1c4   :  { %451 = vsyncpa [#allocation3 + $0x1], 1 }
 0x1c5   :  { %452 = vsyncpa [#allocation5], 1 }

</bundles_post_ra>
